<compile_context>
chip_gen: v7x
topology: tpu7x:2x2x1
jax: 0.10.0
libtpu: 0.0.40
codegen_flags: <defaults>
</compile_context>

<pallas_src>
import jax
import jax.numpy as jnp
from jax.experimental import pallas as pl
from jax.experimental.pallas import tpu as pltpu

LAYER_DIMS = [12, 30, 20, 15, 15, 10, 1]
N_LAYERS = len(LAYER_DIMS) - 1
PAD = 32  # every layer width (<=30) zero-padded to one 32-row slab


def _mlp_kernel(x_ref, w_ref, b_ref, o_ref):
    """Fused 6x(dense + ReLU) forward in batch-on-lanes layout.

    x_ref : (PAD, batch_tile)        activations, feature rows zero-padded
    w_ref : (N_LAYERS, PAD, PAD)     PyTorch-native (out, in) weights, zero-padded
    b_ref : (N_LAYERS, PAD, 1)       biases, zero-padded
    o_ref : (1, batch_tile)          lane-dense output slab
    """
    h = x_ref[...]
    for l in range(N_LAYERS):  # static unroll: 6 tiny MXU passes, f32 accumulation
        h = jnp.dot(w_ref[l], h, preferred_element_type=jnp.float32) + b_ref[l]
        h = jnp.maximum(h, 0.0)  # nn.ReLU (zero-padded rows stay exactly 0)
    o_ref[...] = h[0:1, :].astype(o_ref.dtype)


def census_income_forward(x, w_packed, b_packed, *, batch_tile=1024,
                          vmem_limit_bytes=32 * 1024 * 1024):
    """x: (B, 12) float32. Returns (B, 1) float32 == CensusIncomeModel(x)."""
    B, F = x.shape
    assert F == LAYER_DIMS[0]
    assert batch_tile % 128 == 0, "batch_tile must be a multiple of 128 (lane width)"
    # NOTE(v7x): keep batch_tile <= 4096 (each intermediate is a (PAD, tile) f32 slab
    # and v7x has half the VMEM of v5e/v6e), and keep the grid >= 2 steps so the
    # 'parallel' batch axis can shard across v7x's 2 TensorCores.

    b_pad = pl.cdiv(B, batch_tile) * batch_tile
    # Host-side layout plumbing only: batch -> lanes, feature rows zero-padded to PAD.
    x_t = jnp.zeros((PAD, b_pad), jnp.float32).at[:F, :B].set(x.T.astype(jnp.float32))

    grid = (b_pad // batch_tile,)
    out = pl.pallas_call(
        _mlp_kernel,
        out_shape=jax.ShapeDtypeStruct((1, b_pad), jnp.float32),
        grid_spec=pltpu.PrefetchScalarGridSpec(
            num_scalar_prefetch=0,
            grid=grid,
            in_specs=[
                pl.BlockSpec((PAD, batch_tile), lambda i: (0, i)),
                # Packed params: full-array blocks, resident in VMEM for every step.
                pl.BlockSpec(w_packed.shape, lambda i: (0, 0, 0)),
                pl.BlockSpec(b_packed.shape, lambda i: (0, 0, 0)),
            ],
            out_specs=pl.BlockSpec((1, batch_tile), lambda i: (0, i)),
        ),
        compiler_params=pltpu.CompilerParams(
            dimension_semantics=("parallel",),
            vmem_limit_bytes=vmem_limit_bytes,
        ),
    )(x_t, w_packed, b_packed)
    return out[0, :B][:, None]  # back to PyTorch's (B, 1)


def init_params(key):
    """PyTorch nn.Linear default init: U(-1/sqrt(fan_in), 1/sqrt(fan_in)).

    Weights are kept in PyTorch-native (out, in) form; biases are (out,)."""
    params = []
    for fan_in, fan_out in zip(LAYER_DIMS[:-1], LAYER_DIMS[1:]):
        key, kw, kb = jax.random.split(key, 3)
        bound = 1.0 / jnp.sqrt(jnp.float32(fan_in))
        w = jax.random.uniform(kw, (fan_out, fan_in), jnp.float32, -bound, bound)
        b = jax.random.uniform(kb, (fan_out,), jnp.float32, -bound, bound)
        params.append((w, b))
    return params


def pack_params(params):
    """Zero-pad the 6 (out,in) weights into (6,32,32) and biases into (6,32,1)."""
    w_packed = jnp.zeros((N_LAYERS, PAD, PAD), jnp.float32)
    b_packed = jnp.zeros((N_LAYERS, PAD, 1), jnp.float32)
    for l, (w, b) in enumerate(params):
        out_d, in_d = w.shape
        w_packed = w_packed.at[l, :out_d, :in_d].set(w)
        b_packed = b_packed.at[l, :out_d, 0].set(b)
    return w_packed, b_packed


def reference_forward(x, params):
    """Pure-JAX reference matching the PyTorch module (x @ W.T + b, ReLU each layer)."""
    h = x
    for w, b in params:
        h = jnp.maximum(h @ w.T + b, 0.0)
    return h  # (B, 1) — final ReLU kept to match the module's forward() exactly


if __name__ == "__main__":
    key = jax.random.PRNGKey(0)
    kx, kp = jax.random.split(key)

    batch = 200  # small, deliberately NOT a multiple of the tile to exercise padding
    x = jax.random.normal(kx, (batch, LAYER_DIMS[0]), jnp.float32)
    params = init_params(kp)
    w_packed, b_packed = pack_params(params)

    out = census_income_forward(x, w_packed, b_packed, batch_tile=128)
    out = jax.block_until_ready(out)

    ref = reference_forward(x, params)
    assert out.shape == (batch, 1)
    assert jnp.allclose(out, ref, atol=2e-5, rtol=2e-5), "mismatch vs reference"

    print("KERNEL_OK")
</pallas_src>

<mosaic_0001>
module attributes {stable_mosaic.version = 11 : i64} {
  func.func @_mlp_kernel(%arg0: i32, %arg1: memref<32x128xf32, #tpu.memory_space<vmem>>, %arg2: memref<6x32x32xf32, #tpu.memory_space<vmem>>, %arg3: memref<6x32x1xf32, #tpu.memory_space<vmem>>, %arg4: memref<1x128xf32, #tpu.memory_space<vmem>>) attributes {dimension_semantics = [#tpu.dimension_semantics<parallel>], iteration_bounds = array<i64: 2>, scalar_prefetch = 0 : i64, scratch_operands = 0 : i64, tpu.core_type = #tpu.core_type<tc>, window_params = [{transform_indices = @transform_0, window_bounds = array<i64: 32, 128>}, {pipeline_mode = #tpu.pipeline_mode<synchronous>, transform_indices = @transform_1, window_bounds = array<i64: 6, 32, 32>}, {pipeline_mode = #tpu.pipeline_mode<synchronous>, transform_indices = @transform_2, window_bounds = array<i64: 6, 32, 1>}, {transform_indices = @transform_3, window_bounds = array<i64: 1, 128>}]} {
    %c0 = arith.constant 0 : index
    %c0_0 = arith.constant 0 : index
    %0 = vector.load %arg1[%c0, %c0_0] : memref<32x128xf32, #tpu.memory_space<vmem>>, vector<32x128xf32>
    %c0_1 = arith.constant 0 : index
    %c0_2 = arith.constant 0 : index
    %c0_3 = arith.constant 0 : index
    %1 = vector.load %arg2[%c0_1, %c0_2, %c0_3] : memref<6x32x32xf32, #tpu.memory_space<vmem>>, vector<1x32x32xf32>
    %2 = vector.shape_cast %1 : vector<1x32x32xf32> to vector<32x32xf32>
    %cst = arith.constant dense<0.000000e+00> : vector<32x128xf32>
    %3 = tpu.matmul %2, %0, %cst {dimension_numbers = #tpu.dot_dimension_numbers<[1], [0], [0], [1], [0, 0, 1, 1], [], []>} : vector<32x32xf32>, vector<32x128xf32>, vector<32x128xf32> -> vector<32x128xf32>
    %c0_4 = arith.constant 0 : index
    %c0_5 = arith.constant 0 : index
    %c0_6 = arith.constant 0 : index
    %4 = vector.load %arg3[%c0_4, %c0_5, %c0_6] : memref<6x32x1xf32, #tpu.memory_space<vmem>>, vector<1x32x1xf32>
    %5 = vector.shape_cast %4 : vector<1x32x1xf32> to vector<32x1xf32>
    %6 = vector.broadcast %5 : vector<32x1xf32> to vector<32x128xf32>
    %7 = arith.addf %3, %6 : vector<32x128xf32>
    %cst_7 = arith.constant 0.000000e+00 : f32
    %8 = vector.broadcast %cst_7 : f32 to vector<32x128xf32>
    %9 = arith.maximumf %7, %8 : vector<32x128xf32>
    %c1 = arith.constant 1 : index
    %c0_8 = arith.constant 0 : index
    %c0_9 = arith.constant 0 : index
    %10 = vector.load %arg2[%c1, %c0_8, %c0_9] : memref<6x32x32xf32, #tpu.memory_space<vmem>>, vector<1x32x32xf32>
    %11 = vector.shape_cast %10 : vector<1x32x32xf32> to vector<32x32xf32>
    %cst_10 = arith.constant dense<0.000000e+00> : vector<32x128xf32>
    %12 = tpu.matmul %11, %9, %cst_10 {dimension_numbers = #tpu.dot_dimension_numbers<[1], [0], [0], [1], [0, 0, 1, 1], [], []>} : vector<32x32xf32>, vector<32x128xf32>, vector<32x128xf32> -> vector<32x128xf32>
    %c1_11 = arith.constant 1 : index
    %c0_12 = arith.constant 0 : index
    %c0_13 = arith.constant 0 : index
    %13 = vector.load %arg3[%c1_11, %c0_12, %c0_13] : memref<6x32x1xf32, #tpu.memory_space<vmem>>, vector<1x32x1xf32>
    %14 = vector.shape_cast %13 : vector<1x32x1xf32> to vector<32x1xf32>
    %15 = vector.broadcast %14 : vector<32x1xf32> to vector<32x128xf32>
    %16 = arith.addf %12, %15 : vector<32x128xf32>
    %cst_14 = arith.constant 0.000000e+00 : f32
    %17 = vector.broadcast %cst_14 : f32 to vector<32x128xf32>
    %18 = arith.maximumf %16, %17 : vector<32x128xf32>
    %c2 = arith.constant 2 : index
    %c0_15 = arith.constant 0 : index
    %c0_16 = arith.constant 0 : index
    %19 = vector.load %arg2[%c2, %c0_15, %c0_16] : memref<6x32x32xf32, #tpu.memory_space<vmem>>, vector<1x32x32xf32>
    %20 = vector.shape_cast %19 : vector<1x32x32xf32> to vector<32x32xf32>
    %cst_17 = arith.constant dense<0.000000e+00> : vector<32x128xf32>
    %21 = tpu.matmul %20, %18, %cst_17 {dimension_numbers = #tpu.dot_dimension_numbers<[1], [0], [0], [1], [0, 0, 1, 1], [], []>} : vector<32x32xf32>, vector<32x128xf32>, vector<32x128xf32> -> vector<32x128xf32>
    %c2_18 = arith.constant 2 : index
    %c0_19 = arith.constant 0 : index
    %c0_20 = arith.constant 0 : index
    %22 = vector.load %arg3[%c2_18, %c0_19, %c0_20] : memref<6x32x1xf32, #tpu.memory_space<vmem>>, vector<1x32x1xf32>
    %23 = vector.shape_cast %22 : vector<1x32x1xf32> to vector<32x1xf32>
    %24 = vector.broadcast %23 : vector<32x1xf32> to vector<32x128xf32>
    %25 = arith.addf %21, %24 : vector<32x128xf32>
    %cst_21 = arith.constant 0.000000e+00 : f32
    %26 = vector.broadcast %cst_21 : f32 to vector<32x128xf32>
    %27 = arith.maximumf %25, %26 : vector<32x128xf32>
    %c3 = arith.constant 3 : index
    %c0_22 = arith.constant 0 : index
    %c0_23 = arith.constant 0 : index
    %28 = vector.load %arg2[%c3, %c0_22, %c0_23] : memref<6x32x32xf32, #tpu.memory_space<vmem>>, vector<1x32x32xf32>
    %29 = vector.shape_cast %28 : vector<1x32x32xf32> to vector<32x32xf32>
    %cst_24 = arith.constant dense<0.000000e+00> : vector<32x128xf32>
    %30 = tpu.matmul %29, %27, %cst_24 {dimension_numbers = #tpu.dot_dimension_numbers<[1], [0], [0], [1], [0, 0, 1, 1], [], []>} : vector<32x32xf32>, vector<32x128xf32>, vector<32x128xf32> -> vector<32x128xf32>
    %c3_25 = arith.constant 3 : index
    %c0_26 = arith.constant 0 : index
    %c0_27 = arith.constant 0 : index
    %31 = vector.load %arg3[%c3_25, %c0_26, %c0_27] : memref<6x32x1xf32, #tpu.memory_space<vmem>>, vector<1x32x1xf32>
    %32 = vector.shape_cast %31 : vector<1x32x1xf32> to vector<32x1xf32>
    %33 = vector.broadcast %32 : vector<32x1xf32> to vector<32x128xf32>
    %34 = arith.addf %30, %33 : vector<32x128xf32>
    %cst_28 = arith.constant 0.000000e+00 : f32
    %35 = vector.broadcast %cst_28 : f32 to vector<32x128xf32>
    %36 = arith.maximumf %34, %35 : vector<32x128xf32>
    %c4 = arith.constant 4 : index
    %c0_29 = arith.constant 0 : index
    %c0_30 = arith.constant 0 : index
    %37 = vector.load %arg2[%c4, %c0_29, %c0_30] : memref<6x32x32xf32, #tpu.memory_space<vmem>>, vector<1x32x32xf32>
    %38 = vector.shape_cast %37 : vector<1x32x32xf32> to vector<32x32xf32>
    %cst_31 = arith.constant dense<0.000000e+00> : vector<32x128xf32>
    %39 = tpu.matmul %38, %36, %cst_31 {dimension_numbers = #tpu.dot_dimension_numbers<[1], [0], [0], [1], [0, 0, 1, 1], [], []>} : vector<32x32xf32>, vector<32x128xf32>, vector<32x128xf32> -> vector<32x128xf32>
    %c4_32 = arith.constant 4 : index
    %c0_33 = arith.constant 0 : index
    %c0_34 = arith.constant 0 : index
    %40 = vector.load %arg3[%c4_32, %c0_33, %c0_34] : memref<6x32x1xf32, #tpu.memory_space<vmem>>, vector<1x32x1xf32>
    %41 = vector.shape_cast %40 : vector<1x32x1xf32> to vector<32x1xf32>
    %42 = vector.broadcast %41 : vector<32x1xf32> to vector<32x128xf32>
    %43 = arith.addf %39, %42 : vector<32x128xf32>
    %cst_35 = arith.constant 0.000000e+00 : f32
    %44 = vector.broadcast %cst_35 : f32 to vector<32x128xf32>
    %45 = arith.maximumf %43, %44 : vector<32x128xf32>
    %c5 = arith.constant 5 : index
    %c0_36 = arith.constant 0 : index
    %c0_37 = arith.constant 0 : index
    %46 = vector.load %arg2[%c5, %c0_36, %c0_37] : memref<6x32x32xf32, #tpu.memory_space<vmem>>, vector<1x32x32xf32>
    %47 = vector.shape_cast %46 : vector<1x32x32xf32> to vector<32x32xf32>
    %cst_38 = arith.constant dense<0.000000e+00> : vector<32x128xf32>
    %48 = tpu.matmul %47, %45, %cst_38 {dimension_numbers = #tpu.dot_dimension_numbers<[1], [0], [0], [1], [0, 0, 1, 1], [], []>} : vector<32x32xf32>, vector<32x128xf32>, vector<32x128xf32> -> vector<32x128xf32>
    %c5_39 = arith.constant 5 : index
    %c0_40 = arith.constant 0 : index
    %c0_41 = arith.constant 0 : index
    %49 = vector.load %arg3[%c5_39, %c0_40, %c0_41] : memref<6x32x1xf32, #tpu.memory_space<vmem>>, vector<1x32x1xf32>
    %50 = vector.shape_cast %49 : vector<1x32x1xf32> to vector<32x1xf32>
    %51 = vector.broadcast %50 : vector<32x1xf32> to vector<32x128xf32>
    %52 = arith.addf %48, %51 : vector<32x128xf32>
    %cst_42 = arith.constant 0.000000e+00 : f32
    %53 = vector.broadcast %cst_42 : f32 to vector<32x128xf32>
    %54 = arith.maximumf %52, %53 : vector<32x128xf32>
    %55 = vector.extract_strided_slice %54 {offsets = [0, 0], sizes = [1, 128], strides = [1, 1]} : vector<32x128xf32> to vector<1x128xf32>
    %c0_43 = arith.constant 0 : index
    %c0_44 = arith.constant 0 : index
    %56 = vector.load %arg4[%c0_43, %c0_44] : memref<1x128xf32, #tpu.memory_space<vmem>>, vector<1x128xf32>
    tpu.vector_store %arg4[%c0_43, %c0_44], %55 {strides = array<i32>} : memref<1x128xf32, #tpu.memory_space<vmem>>, vector<1x128xf32>,
    return
  }
  func.func @transform_0(%arg0: i32) -> (i32, i32) {
    %c0_i32 = arith.constant 0 : i32
    %c0_i32_0 = arith.constant 0 : i32
    return %c0_i32, %arg0 : i32, i32
  }
  func.func @transform_1(%arg0: i32) -> (i32, i32, i32) {
    %c0_i32 = arith.constant 0 : i32
    %c0_i32_0 = arith.constant 0 : i32
    %c0_i32_1 = arith.constant 0 : i32
    %c0_i32_2 = arith.constant 0 : i32
    return %c0_i32, %c0_i32_0, %c0_i32_1 : i32, i32, i32
  }
  func.func @transform_2(%arg0: i32) -> (i32, i32, i32) {
    %c0_i32 = arith.constant 0 : i32
    %c0_i32_0 = arith.constant 0 : i32
    %c0_i32_1 = arith.constant 0 : i32
    %c0_i32_2 = arith.constant 0 : i32
    return %c0_i32, %c0_i32_0, %c0_i32_1 : i32, i32, i32
  }
  func.func @transform_3(%arg0: i32) -> (i32, i32) {
    %c0_i32 = arith.constant 0 : i32
    %c0_i32_0 = arith.constant 0 : i32
    return %c0_i32, %arg0 : i32, i32
  }
}

</mosaic_0001>

<bundles_post_ra>
// kernel: tpu_custom_call.1
= control target key start
LH: loop header
LB: loop body
LE: loop exit
PB: predicated region body
PF: predicated region fallthrough
CT: control target
= control target key end

     0   :  { %8 = vsyncpa [#allocation3], 0  ;;  %s1799_s0 = inlined_call_operand.hbm [shape: f32[32,256], index: 0, kind: input, shape index: {}]   ;;  %s1800_s1 = inlined_call_operand.vmem [shape: f32[6,32,32], index: 1, kind: input, shape index: {}]   ;;  %s1801_s2 = inlined_call_operand.vmem [shape: f32[6,32,1], index: 2, kind: input, shape index: {}]   ;;  %s1802_s3 = inlined_call_operand.hbm [shape: f32[1,256], index: 3, kind: output, shape index: {}]  }
   0x1   :  { %10 = vsyncpa [#allocation3 + $0x1], 0 }
   0x2   :  { %11 = vsyncpa [#allocation4], 0 }
   0x3   :  { %13 = vsyncpa [#allocation4 + $0x1], 0  ;;  %s1477_s12 = smov 0   ;;  %s1479_s13 = smov 0  }
   0x4   :  { %s1481_s14 = smov 0   ;;  %s1483_s15 = smov 0  }
   0x5 LB: > { %s1498_s16 = sadd.s32 4294967295, %s1449_s15   ;;  %s1047_s17 = sadd.s32 4294967294, %s1449_s15   ;;  %s1449_s15 = sphi %s1483_s15, %s1816_s15   ;;  %s1445_s14 = sphi %s1481_s14, %s1815_s14   ;;  %s1441_s13 = sphi %s1479_s13, %s1814_s13   ;;  %s1437_s12 = sphi %s1477_s12, %s1813_s12  }
   0x6   : > { %s1502_s18 = sadd.s32 1, %s1449_s15   ;;  %s26_s19 = sadd.s32 1, %s1445_s14 }
   0x7   : > { %s23_s20 = ssub.s32 %s1449_s15, %s1502_s18  ;;  %p33_p0 = scmp.ne.s32.totalorder %s1445_s14, %s1441_s13 }
   0x8   : > { %p24_p1 = scmp.eq.s32.totalorder %s23_s20, 0  ;;  %p34_p2 = scmp.eq.s32.totalorder %s1449_s15, 0 }
   0x9   : > { %p39_p3 = scmp.ne.s32.totalorder %s1441_s13, %s1437_s12  ;;  %p40_p4 = scmp.eq.s32.totalorder %s1498_s16, 0 }
   0xa   : > { %s1514_s21 = scalar_select %p24_p1, %s1445_s14, %s26_s19  }
   0xb   : > { %p1516_p5 = por %p34_p2, %p33_p0  ;;  %p1520_p6 = por %p40_p4, %p39_p3 }
   0xc   : > { %p105_p7 = scmp.eq.s32.totalorder %s1498_s16, 1  ;;  %p111_p8 = scmp.eq.s32.totalorder %s1047_s17, 1 }
   0xd   : > { %p1313_p10 = scmp.lt.s32.totalorder %s1449_s15, 2  ;;  %s137_s26 = sand.u32 1, %s1445_s14  }
   0xe   : > { %p1527_p11 = por %p105_p7, %p33_p0  ;;  %p1531_p12 = por %p111_p8, %p39_p3 }
   0xf   : > { %s1051_s27 = sshll.u32 %s1449_s15, 7  ;;  %s1050_s28 = sshll.u32 %s137_s26, 5 }
  0x10   : > { %s1806_s24 = scalar_select %p1527_p11, 1, 0 }
  0x11   : > { %s1807_s25 = scalar_select %p1531_p12, 1, 0 }
  0x12   : > { %s1540_s4 = scalar_lea.hbm %s1799_s0, %s1051_s27  ;;  %s141_s5 = scalar_lea.vmem [#allocation2], %s1050_s28 }
  0x13   : > { %s147_s6 = sshll.u32 %s141_s5, 4  ;;  %p1544_p13 = pnand %p1313_p10, %p1516_p5  ;;  %s1548_s6 = int_to_ptr.vmem [resolvable:$true] %s147_s6 }
  0x14   : > { %s1551_s8 = scalar_lea.sflag [#allocation3], %s137_s26  ;;  %s1353_s9 = scalar_lea.hbm %s1540_s4, 512 }
  0x15   : > { %p1354_p1 = scmp.ne.s32.totalorder %s1540_s4, %s1353_s9  ;;  %p1355_p2 = pneg %p1544_p13 }
  0x16   : > { %s1358_s17 = scalar_lea.hbm %s1799_s0, 1024  ;;  %p1359_p5 = scmp.lt.u32.totalorder %s1540_s4, %s1799_s0 }
  0x17   : > { %p1356_p3 = pnand %p1355_p2, %p1354_p1  ;;  %p1360_p7 = scmp.lt.u32.totalorder %s1358_s17, %s1353_s9 }
  0x18   : > { %p1362_p10 = scmp.lt.u32.totalorder %s1353_s9, %s1540_s4 }
  0x19   : > { %p1357_p4 = pneg %p1356_p3  ;;  %p1361_p8 = por %p1360_p7, %p1359_p5 }
  0x1b   : > { %p1363_p9 = por %p1362_p10, %p1361_p8 }
  0x1d   : > { %p1364_p0 = pnand %p1363_p9, %p1357_p4 }
  0x1f   : > { %1367 = shalt.err (!%p1364_p0)
}
  0x20   : > { %s1368_s22 = scalar_lea.vmem %s1548_s6, 512  ;;  %s1451_s26 = smov [#allocation2]  }
  0x21   : > { %p1369_p1 = scmp.ne.s32.totalorder %s1548_s6, %s1368_s22  ;;  %s1373_s27 = sshll.u32 %s1451_s26, 4  ;;  %s1374_s27 = int_to_ptr.vmem [resolvable:$false] %s1373_s27 }
  0x22   : > { %s1375_s28 = scalar_lea.vmem %s1374_s27, 1024  ;;  %p1376_p11 = scmp.lt.s32.totalorder %s1548_s6, %s1374_s27 }
  0x23   : > { %p1371_p3 = pnand %p1369_p1, %p1355_p2  ;;  %p1377_p5 = scmp.lt.s32.totalorder %s1375_s28, %s1368_s22 }
  0x25   : > { %p1372_p12 = pneg %p1371_p3  ;;  %p1378_p7 = por %p1377_p5, %p1376_p11 }
  0x27   : > { %p1379_p8 = pnand %p1378_p7, %p1372_p12 }
  0x29   : > { %1382 = shalt.err (!%p1379_p8)
}
  0x2a   : > { %s1452_s29 = smov 256   ;;  %s1453_s30 = smov 128  }
  0x2b   : > { %s1454_s5 = smov 8   ;;  %p155_p9 = scmp.lt.s32.totalorder %s1449_s15, 3 }
  0x2c   : > { %1308 = dma.hbm_to_vmem [thread:$0]  (!%p1544_p13), %s1540_s4, 512, %s1548_s6, %s1551_s8, %s1452_s29, %s1453_s30, %s1454_s5  }
  0x2d   : > { %p1809_p0 = scmp.ge.s32.totalorder %s1449_s15, 1 }
  0x2f   : > { %p156_p2 = pnand %p1809_p0, %p155_p9 }
  0x30   : > { %s1583_s9 = sand.u32 (!%p156_p2), 1, %s1441_s13  }
  0x31   : > { %159 = sbr.rel (%p156_p2) target bundleno = 1434 (0x59a), region = 32  ;;  %s1053_s10 = sshll.u32 (!%p156_p2), %s1583_s9, 5 }
  0x32   : > { %s162_s11 = scalar_lea.sflag (!%p156_p2), [#allocation3], %s1583_s9  ;;  %s165_s17 = scalar_lea.vmem (!%p156_p2), [#allocation2], %s1053_s10 }
  0x38   : > { %1428 = dma.done.wait (%p1520_p6), %s162_s11, 512  }
  0x39   : > { %1430 = vsyncadd (%p1520_p6), %s162_s11, 4294966784  ;;  %v1455_v0 = vmov 0   ;;  %vm219_vm0 = vcmask 261120   ;;  %v187_v1 = vld [vmem:[%s165_s17] sm:$0xff]  ;;  %v188_v2 = vld [vmem:[%s165_s17 + $0x8] sm:$0xff]  ;;  %s1118_s19 = sshll.u32 %s1498_s16, 4 }
  0x3a   : > { %1351 = vset.pattern.permute.xlu0 %v1455_v0  ;;  %1352 = vset.pattern.permute.xlu1 %v1455_v0  ;;  %v189_v3 = vld [vmem:[%s165_s17 + $0x10] sm:$0xff]  ;;  %v1253_v4 = vpack.c.bf16 %v188_v2, %v187_v1  ;;  %v190_v5 = vld [vmem:[%s165_s17 + $0x18] sm:$0xff]  ;;  %v191_v6 = vld [vmem:[%s1800_s1] sm:$0xff]  ;;  %s186_s20 = scalar_lea.vmem [#allocation5], %s1583_s9  ;;  %s1755_s28 = scalar_lea.hbm %s1802_s3, %s1118_s19 }
  0x3b   : > { %v1257_v7 = vpack.c.bf16 %v190_v5, %v189_v3  ;;  %1177 = vmatprep.mubr.msk.f32.mxu0 %vm219_vm0, %v191_v6  ;;  %v195_v8 = vld [vmem:[%s1801_s2] sm:$0xff]  ;;  %v197_v9 = vld [vmem:[%s1801_s2 + $0x10] sm:$0xff]  ;;  %v196_v10 = vld [vmem:[%s1801_s2 + $0x8] sm:$0xff]  ;;  %s981_s22 = sshll.u32 %s186_s20, 4  ;;  %s969_s29 = scalar_lea.sflag [#allocation4], %s1583_s9  ;;  %s1757_s22 = int_to_ptr.vmem [resolvable:$true] %s981_s22 }
  0x3c   : > { %1254 = vmatprep.subr.bf16.mxu0 %v1253_v4  ;;  %201 = vperm.xlu0 %1351, %v195_v8   ;;  %v198_v11 = vld [vmem:[%s1801_s2 + $0x18] sm:$0xff]  ;;  %v192_v12 = vld [vmem:[%s1800_s1 + $0x8] sm:$0xff]  ;;  %v1062_v13 = vld [vmem:[%s1801_s2 + $0x20] sm:$0xff]  ;;  %s1383_s30 = scalar_lea.vmem %s1757_s22, 16  ;;  %p1810_p11 = scmp.ne.s32.totalorder %s1806_s24, 0 }
  0x3d   : > { %1256 = vmatpush3.bf16.msra.mxu0 %v1253_v4  ;;  %211 = vperm.xlu1 %1352, %v197_v9   ;;  %v193_v14 = vld [vmem:[%s1800_s1 + $0x10] sm:$0xff]  ;;  %v1063_v15 = vld [vmem:[%s1801_s2 + $0x28] sm:$0xff]  ;;  %v194_v16 = vld [vmem:[%s1800_s1 + $0x18] sm:$0xff]  ;;  %p1384_p6 = scmp.ne.s32.totalorder %s1757_s22, %s1383_s30  ;;  %s1456_s16 = smov [#allocation5]  }
  0x3e   : > { %1258 = vmatprep.subr.bf16.mxu0 %v1257_v7  ;;  %v1064_v17 = vld [vmem:[%s1801_s2 + $0x30] sm:$0xff]  ;;  %v1065_v18 = vld [vmem:[%s1801_s2 + $0x38] sm:$0xff]  ;;  %v1074_v19 = vld [vmem:[%s1801_s2 + $0x40] sm:$0xff]  ;;  %s1387_s5 = sshll.u32 %s1456_s16, 4  ;;  %s1388_s5 = int_to_ptr.vmem [resolvable:$false] %s1387_s5 }
  0x3f   : > { %v1075_v20 = vld [vmem:[%s1801_s2 + $0x48] sm:$0xff]  ;;  %v1076_v21 = vld [vmem:[%s1801_s2 + $0x50] sm:$0xff]  ;;  %v1077_v22 = vld [vmem:[%s1801_s2 + $0x58] sm:$0xff]  ;;  %p1385_p12 = pnand %p1384_p6, %p1810_p11  ;;  %s1389_s10 = scalar_lea.vmem %s1388_s5, 32 }
  0x40   : > { %206 = vperm.xlu0 %1351, %v196_v10   ;;  %v1086_v23 = vld [vmem:[%s1801_s2 + $0x60] sm:$0xff]  ;;  %v1087_v24 = vld [vmem:[%s1801_s2 + $0x68] sm:$0xff]  ;;  %v1088_v25 = vld [vmem:[%s1801_s2 + $0x70] sm:$0xff]  ;;  %p1390_p4 = scmp.lt.s32.totalorder %s1757_s22, %s1388_s5  ;;  %p1391_p10 = scmp.lt.s32.totalorder %s1389_s10, %s1383_s30 }
  0x41   : > { %1260 = vmatpush3.bf16.msra.mxu0 %v1257_v7  ;;  %216 = vperm.xlu1 %1352, %v198_v11   ;;  %v1089_v26 = vld [vmem:[%s1801_s2 + $0x78] sm:$0xff]  ;;  %v1098_v27 = vld [vmem:[%s1801_s2 + $0x80] sm:$0xff]  ;;  %v1099_v28 = vld [vmem:[%s1801_s2 + $0x88] sm:$0xff]  ;;  %p1386_p13 = pneg %p1385_p12 }
  0x42   : > { %v1100_v29 = vld [vmem:[%s1801_s2 + $0x90] sm:$0xff]  ;;  %v1101_v30 = vld [vmem:[%s1801_s2 + $0x98] sm:$0xff]  ;;  %v1110_v31 = vld [vmem:[%s1801_s2 + $0xa0] sm:$0xff]  ;;  %p1392_p1 = por %p1391_p10, %p1390_p4 }
  0x43   : > { %v1058_v32 = vld [vmem:[%s1800_s1 + $0x20] sm:$0xff]  ;;  %v1059_v51 = vld [vmem:[%s1800_s1 + $0x28] sm:$0xff]  ;;  %v1060_v52 = vld [vmem:[%s1800_s1 + $0x30] sm:$0xff] }
  0x44   : > { %1178 = vmatmul.mubr.msk.f32.vlgmr.msra.gmra.mrb[0].mxu0 %vm219_vm0, %v192_v12  ;;  %333 = vperm.xlu0 %1351, %v1062_v13   ;;  %v1061_v53 = vld [vmem:[%s1800_s1 + $0x38] sm:$0xff]  ;;  %v1070_v54 = vld [vmem:[%s1800_s1 + $0x40] sm:$0xff]  ;;  %v1071_v9 = vld [vmem:[%s1800_s1 + $0x48] sm:$0xff]  ;;  %p1393_p3 = pnand %p1392_p1, %p1386_p13 }
  0x45   : > { %1180 = vmatprep.mubr.msk.f32.mxu0 %vm219_vm0, %v193_v14  ;;  %338 = vperm.xlu1 %1352, %v1063_v15   ;;  %v1072_v10 = vld [vmem:[%s1800_s1 + $0x50] sm:$0xff]  ;;  %v1073_v11 = vld [vmem:[%s1800_s1 + $0x58] sm:$0xff]  ;;  %v1082_v12 = vld [vmem:[%s1800_s1 + $0x60] sm:$0xff] }
  0x46   : > { %1191 = vmatprep.mubr.msk.f32.mxu1 %vm219_vm0, %v1058_v32  ;;  %v1084_v32 = vld [vmem:[%s1800_s1 + $0x70] sm:$0xff] }
  0x48   : > { %1181 = vmatmul.mubr.msk.f32.gmra.mrb[2].mxu0 %vm219_vm0, %v194_v16  ;;  %343 = vperm.xlu0 %1351, %v1064_v17  }
  0x49   : > { %348 = vperm.xlu1 %1352, %v1065_v18   ;;  %1205 = vmatprep.mubr.msk.f32.mxu0 %vm219_vm0, %v1070_v54  ;;  %v1096_v54 = vld [vmem:[%s1800_s1 + $0x90] sm:$0xff] }
  0x4c   : > { %464 = vperm.xlu0 %1351, %v1074_v19  }
  0x4d   : > { %469 = vperm.xlu1 %1352, %v1075_v20  }
  0x50   : > { %474 = vperm.xlu0 %1351, %v1076_v21  }
  0x51   : > { %479 = vperm.xlu1 %1352, %v1077_v22  }
  0x54   : > { %595 = vperm.xlu0 %1351, %v1086_v23  }
  0x55   : > { %600 = vperm.xlu1 %1352, %v1087_v24  }
  0x58   : > { %605 = vperm.xlu0 %1351, %v1088_v25  }
  0x59   : > { %610 = vperm.xlu1 %1352, %v1089_v26  }
  0x5c   : > { %726 = vperm.xlu0 %1351, %v1098_v27  }
  0x5d   : > { %731 = vperm.xlu1 %1352, %v1099_v28  }
  0x60   : > { %736 = vperm.xlu0 %1351, %v1100_v29  }
  0x61   : > { %741 = vperm.xlu1 %1352, %v1101_v30  }
  0x64   : > { %857 = vperm.xlu0 %1351, %v1110_v31   ;;  %v1083_v31 = vld [vmem:[%s1800_s1 + $0x68] sm:$0xff] }
  0xbb   : > { %v202_v33 = vpop.permute.xlu0 %201 }
  0xbc   : > { %v212_v34 = vpop.permute.xlu1 %211 }
  0xbf   : > { %v207_v35 = vpop.permute.xlu0 %206 }
  0xc0   : > { %v217_v41 = vpop.permute.xlu1 %216 }
  0xc3   : > { %v334_v56 = vpop.permute.xlu0 %333 }
  0xc4   : > { %v339_v55 = vpop.permute.xlu1 %338 }
  0xc7   : > { %v344_v1 = vpop.permute.xlu0 %343 }
  0xc8   : > { %v349_v62 = vpop.permute.xlu1 %348 }
  0xcb   : > { %v465_v14 = vpop.permute.xlu0 %464 }
  0xcc   : > { %v470_v13 = vpop.permute.xlu1 %469 }
  0xcf   : > { %v475_v23 = vpop.permute.xlu0 %474 }
  0xd0   : > { %v480_v20 = vpop.permute.xlu1 %479 }
 0x117   : > { %v1179_v36 = vpop.f32.mrb[0].mxu0 }
 0x118   : > { %v304_v37 = vadd.f32 %v1179_v36, %v207_v35  ;;  %v298_v38 = vpop.f32.mrb[1].mxu0  ;;  %v601_v35 = vpop.permute.xlu1 %600 }
 0x119   : > { %v299_v39 = vadd.f32 %v298_v38, %v202_v33  ;;  %v1085_v33 = vld [vmem:[%s1800_s1 + $0x78] sm:$0xff]  ;;  %v596_v36 = vpop.permute.xlu0 %595 }
 0x11a   : > { %v318_v40 = vmax.f32 %v304_v37, 0.0 }
 0x11b   : > { %v317_v42 = vmax.f32 %v299_v39, 0.0  ;;  %v1182_v43 = vpop.f32.mrb[2].mxu0 }
 0x11c   : > { %v314_v44 = vadd.f32 %v1182_v43, %v217_v41  ;;  %v308_v45 = vpop.f32.mrb[3].mxu0 }
 0x11d   : > { %v309_v46 = vadd.f32 %v308_v45, %v212_v34  ;;  %v1261_v47 = vpack.c.bf16 %v318_v40, %v317_v42  ;;  %v1094_v34 = vld [vmem:[%s1800_s1 + $0x80] sm:$0xff]  ;;  %v611_v42 = vpop.permute.xlu1 %610  ;;  %v606_v45 = vpop.permute.xlu0 %605 }
 0x11e   : > { %v320_v48 = vmax.f32 %v314_v44, 0.0 }
 0x11f   : > { %v319_v49 = vmax.f32 %v309_v46, 0.0  ;;  %1262 = vmatprep.subr.bf16.mxu1 %v1261_v47 }
 0x120   : > { %1264 = vmatpush3.bf16.msra.mxu1 %v1261_v47 }
 0x121   : > { %v1265_v50 = vpack.c.bf16 %v320_v48, %v319_v49 }
 0x123   : > { %1266 = vmatprep.subr.bf16.mxu1 %v1265_v50 }
 0x124   : > { %1268 = vmatpush3.bf16.msra.mxu1 %v1265_v50 }
 0x127   : > { %1192 = vmatmul.mubr.msk.f32.vlgmr.msra.gmra.mrb[0].mxu1 %vm219_vm0, %v1059_v51 }
 0x128   : > { %1194 = vmatprep.mubr.msk.f32.mxu1 %vm219_vm0, %v1060_v52 }
 0x12b   : > { %1195 = vmatmul.mubr.msk.f32.gmra.mrb[2].mxu1 %vm219_vm0, %v1061_v53  ;;  %v1095_v53 = vld [vmem:[%s1800_s1 + $0x88] sm:$0xff] }
 0x12c   : > { %1219 = vmatprep.mubr.msk.f32.mxu1 %vm219_vm0, %v1082_v12  ;;  %v1108_v12 = vld [vmem:[%s1800_s1 + $0xb0] sm:$0xff] }
 0x1fa   : > { %v1193_v57 = vpop.f32.mrb[0].mxu1 }
 0x1fb   : > { %v435_v58 = vadd.f32 %v1193_v57, %v339_v55  ;;  %v429_v59 = vpop.f32.mrb[1].mxu1  ;;  %v1097_v55 = vld [vmem:[%s1800_s1 + $0x98] sm:$0xff]  ;;  %v732_v57 = vpop.permute.xlu1 %731 }
 0x1fc   : > { %v430_v60 = vadd.f32 %v429_v59, %v334_v56  ;;  %v1106_v56 = vld [vmem:[%s1800_s1 + $0xa0] sm:$0xff] }
 0x1fd   : > { %v449_v61 = vmax.f32 %v435_v58, 0.0  ;;  %v727_v58 = vpop.permute.xlu0 %726 }
 0x1fe   : > { %v448_v63 = vmax.f32 %v430_v60, 0.0  ;;  %v1196_v0 = vpop.f32.mrb[2].mxu1 }
 0x1ff   : > { %v445_v2 = vadd.f32 %v1196_v0, %v349_v62  ;;  %v439_v3 = vpop.f32.mrb[3].mxu1  ;;  %v742_v0 = vpop.permute.xlu1 %741 }
 0x200   : > { %v1269_v4 = vpack.c.bf16 %v449_v61, %v448_v63  ;;  %v440_v5 = vadd.f32 %v439_v3, %v344_v1 }
 0x201   : > { %v451_v6 = vmax.f32 %v445_v2, 0.0  ;;  %v737_v3 = vpop.permute.xlu0 %736 }
 0x202   : > { %v450_v7 = vmax.f32 %v440_v5, 0.0  ;;  %1270 = vmatprep.subr.bf16.mxu0 %v1269_v4 }
 0x203   : > { %1272 = vmatpush3.bf16.msra.mxu0 %v1269_v4 }
 0x204   : > { %v1273_v8 = vpack.c.bf16 %v451_v6, %v450_v7 }
 0x206   : > { %1274 = vmatprep.subr.bf16.mxu0 %v1273_v8 }
 0x207   : > { %1276 = vmatpush3.bf16.msra.mxu0 %v1273_v8 }
 0x20a   : > { %1206 = vmatmul.mubr.msk.f32.vlgmr.msra.gmra.mrb[4].mxu0 %vm219_vm0, %v1071_v9 }
 0x20b   : > { %1208 = vmatprep.mubr.msk.f32.mxu0 %vm219_vm0, %v1072_v10 }
 0x20e   : > { %1209 = vmatmul.mubr.msk.f32.gmra.mrb[6].mxu0 %vm219_vm0, %v1073_v11  ;;  %v1107_v11 = vld [vmem:[%s1800_s1 + $0xa8] sm:$0xff] }
 0x20f   : > { %1233 = vmatprep.mubr.msk.f32.mxu0 %vm219_vm0, %v1094_v34 }
 0x2dd   : > { %v1207_v15 = vpop.f32.mrb[4].mxu0 }
 0x2de   : > { %v566_v16 = vadd.f32 %v1207_v15, %v470_v13  ;;  %v560_v17 = vpop.f32.mrb[5].mxu0  ;;  %v1109_v13 = vld [vmem:[%s1800_s1 + $0xb8] sm:$0xff]  ;;  %v858_v15 = vpop.permute.xlu0 %857 }
 0x2df   : > { %v561_v18 = vadd.f32 %v560_v17, %v465_v14 }
 0x2e0   : > { %v580_v19 = vmax.f32 %v566_v16, 0.0 }
 0x2e1   : > { %v579_v21 = vmax.f32 %v561_v18, 0.0  ;;  %v1210_v22 = vpop.f32.mrb[6].mxu0 }
 0x2e2   : > { %v576_v24 = vadd.f32 %v1210_v22, %v480_v20  ;;  %v570_v25 = vpop.f32.mrb[7].mxu0 }
 0x2e3   : > { %v1277_v26 = vpack.c.bf16 %v580_v19, %v579_v21  ;;  %v571_v27 = vadd.f32 %v570_v25, %v475_v23 }
 0x2e4   : > { %v582_v28 = vmax.f32 %v576_v24, 0.0 }
 0x2e5   : > { %v581_v29 = vmax.f32 %v571_v27, 0.0  ;;  %1278 = vmatprep.subr.bf16.mxu1 %v1277_v26 }
 0x2e6   : > { %1280 = vmatpush3.bf16.msra.mxu1 %v1277_v26 }
 0x2e7   : > { %v1281_v30 = vpack.c.bf16 %v582_v28, %v581_v29 }
 0x2e9   : > { %1282 = vmatprep.subr.bf16.mxu1 %v1281_v30 }
 0x2ea   : > { %1284 = vmatpush3.bf16.msra.mxu1 %v1281_v30 }
 0x2ed   : > { %1220 = vmatmul.mubr.msk.f32.vlgmr.msra.gmra.mrb[4].mxu1 %vm219_vm0, %v1083_v31 }
 0x2ee   : > { %1222 = vmatprep.mubr.msk.f32.mxu1 %vm219_vm0, %v1084_v32 }
 0x2f1   : > { %1223 = vmatmul.mubr.msk.f32.gmra.mrb[6].mxu1 %vm219_vm0, %v1085_v33 }
 0x2f2   : > { %1247 = vmatprep.mubr.msk.f32.mxu1 %vm219_vm0, %v1106_v56 }
 0x3c0   : > { %v1221_v37 = vpop.f32.mrb[4].mxu1 }
 0x3c1   : > { %v697_v38 = vadd.f32 %v1221_v37, %v601_v35  ;;  %v691_v39 = vpop.f32.mrb[5].mxu1 }
 0x3c2   : > { %v692_v40 = vadd.f32 %v691_v39, %v596_v36 }
 0x3c3   : > { %v711_v41 = vmax.f32 %v697_v38, 0.0 }
 0x3c4   : > { %v710_v43 = vmax.f32 %v692_v40, 0.0  ;;  %v1224_v44 = vpop.f32.mrb[6].mxu1 }
 0x3c5   : > { %v707_v46 = vadd.f32 %v1224_v44, %v611_v42  ;;  %v701_v47 = vpop.f32.mrb[7].mxu1 }
 0x3c6   : > { %v1285_v48 = vpack.c.bf16 %v711_v41, %v710_v43  ;;  %v702_v49 = vadd.f32 %v701_v47, %v606_v45 }
 0x3c7   : > { %v713_v50 = vmax.f32 %v707_v46, 0.0 }
 0x3c8   : > { %v712_v51 = vmax.f32 %v702_v49, 0.0  ;;  %1286 = vmatprep.subr.bf16.mxu0 %v1285_v48 }
 0x3c9   : > { %1288 = vmatpush3.bf16.msra.mxu0 %v1285_v48 }
 0x3ca   : > { %v1289_v52 = vpack.c.bf16 %v713_v50, %v712_v51 }
 0x3cc   : > { %1290 = vmatprep.subr.bf16.mxu0 %v1289_v52 }
 0x3cd   : > { %1292 = vmatpush3.bf16.msra.mxu0 %v1289_v52 }
 0x3d0   : > { %1234 = vmatmul.mubr.msk.f32.vlgmr.msra.gmra.mrb[8].mxu0 %vm219_vm0, %v1095_v53 }
 0x3d1   : > { %1236 = vmatprep.mubr.msk.f32.mxu0 %vm219_vm0, %v1096_v54 }
 0x3d4   : > { %1237 = vmatmul.mubr.msk.f32.gmra.mrb[10].mxu0 %vm219_vm0, %v1097_v55 }
 0x4a3   : > { %v1235_v59 = vpop.f32.mrb[8].mxu0 }
 0x4a4   : > { %v828_v60 = vadd.f32 %v1235_v59, %v732_v57  ;;  %v822_v61 = vpop.f32.mrb[9].mxu0 }
 0x4a5   : > { %v823_v62 = vadd.f32 %v822_v61, %v727_v58 }
 0x4a6   : > { %v842_v63 = vmax.f32 %v828_v60, 0.0 }
 0x4a7   : > { %v841_v1 = vmax.f32 %v823_v62, 0.0  ;;  %v1238_v2 = vpop.f32.mrb[10].mxu0 }
 0x4a8   : > { %v838_v4 = vadd.f32 %v1238_v2, %v742_v0  ;;  %v832_v5 = vpop.f32.mrb[11].mxu0 }
 0x4a9   : > { %v1293_v6 = vpack.c.bf16 %v842_v63, %v841_v1  ;;  %v833_v7 = vadd.f32 %v832_v5, %v737_v3 }
 0x4aa   : > { %v844_v8 = vmax.f32 %v838_v4, 0.0 }
 0x4ab   : > { %v843_v9 = vmax.f32 %v833_v7, 0.0  ;;  %1294 = vmatprep.subr.bf16.mxu1 %v1293_v6 }
 0x4ac   : > { %1296 = vmatpush3.bf16.msra.mxu1 %v1293_v6 }
 0x4ad   : > { %v1297_v10 = vpack.c.bf16 %v844_v8, %v843_v9 }
 0x4af   : > { %1298 = vmatprep.subr.bf16.mxu1 %v1297_v10 }
 0x4b0   : > { %1300 = vmatpush3.bf16.msra.mxu1 %v1297_v10 }
 0x4b3   : > { %1248 = vmatmul.mubr.msk.f32.vlgmr.msra.gmra.mrb[8].mxu1 %vm219_vm0, %v1107_v11 }
 0x4b4   : > { %1250 = vmatprep.mubr.msk.f32.mxu1 %vm219_vm0, %v1108_v12 }
 0x4b7   : > { %1251 = vmatmul.mubr.msk.f32.gmra.mrb[10].mxu1 %vm219_vm0, %v1109_v13 }
 0x586   : > { %v1249_v14 = vpop.f32.mrb[8].mxu1 }
 0x587   : > { %v950_v16 = vpop.f32.mrb[9].mxu1 }
 0x588   : > { %v951_v17 = vadd.f32 %v950_v16, %v858_v15 }
 0x58a   : > { %v966_v18 = vmax.f32 %v951_v17, 0.0  ;;  %v1252_v19 = vpop.f32.mrb[10].mxu1 }
 0x58b   : > { %v959_v20 = vpop.f32.mrb[11].mxu1 }
 0x58c   : > { %967 = vst [vmem:[%s186_s20] sm:$0x1] %v966_v18 }
 0x58d   : > { %1396 = shalt.err (!%p1393_p3)
}
 0x58e   : > { %s1397_s9 = scalar_lea.hbm %s1755_s28, 16  ;;  %s1401_s4 = scalar_lea.hbm %s1802_s3, 32 }
 0x58f   : > { %p1398_p5 = scmp.ne.s32.totalorder %s1755_s28, %s1397_s9  ;;  %p1402_p9 = scmp.lt.u32.totalorder %s1755_s28, %s1802_s3 }
 0x590   : > { %p1403_p0 = scmp.lt.u32.totalorder %s1401_s4, %s1397_s9  ;;  %p1405_p6 = scmp.lt.u32.totalorder %s1397_s9, %s1755_s28 }
 0x591   : > { %p1399_p7 = pnand %p1398_p5, %p1810_p11 }
 0x592   : > { %p1404_p2 = por %p1403_p0, %p1402_p9 }
 0x593   : > { %p1400_p8 = pneg %p1399_p7 }
 0x594   : > { %p1406_p12 = por %p1405_p6, %p1404_p2 }
 0x596   : > { %p1407_p13 = pnand %p1406_p12, %p1400_p8 }
 0x598   : > { %1410 = shalt.err (!%p1407_p13)
}
 0x599   : > { %1303 = dma.vmem_to_hbm [thread:$0]  (%p1810_p11), %s1757_s22, 16, %s1755_s28, %s969_s29  }
 0x59a PF: > { %s993_s8 = sand.u32 1, %s1437_s12   ;;  %p1811_p4 = scmp.ne.s32.totalorder %s1807_s25, 0 }
 0x59b   : > { %p1812_p10 = scmp.ge.s32.totalorder %s1449_s15, 2  ;;  %s994_s23 = scalar_lea.sflag [#allocation4], %s993_s8 }
 0x59d   : > { %p1310_p1 = pnand %p1812_p10, %p1811_p4 }
 0x59f   : > { %1432 = dma.done.wait (!%p1310_p1), %s994_s23, 16  }
 0x5a0   : > { %1434 = vsyncadd (!%p1310_p1), %s994_s23, 4294967280  ;;  %p16_p3 = scmp.ge.s32.totalorder %s1502_s18, 4   ;;  %s1813_s12 = smov %s1441_s13 }
 0x5a1   : > { %s1814_s13 = smov %s1445_s14  ;;  %s1815_s14 = smov %s1514_s21 }
 0x5a2   : > { %s1816_s15 = smov %s1502_s18  ;;  %18 = sbr.rel (!%p16_p3) target bundleno = 5 (0x5), region = 87 }
 0x5a9   :  { %998 = vsyncpa [#allocation3], 1 }
 0x5aa   :  { %1000 = vsyncpa [#allocation3 + $0x1], 1 }
 0x5ab   :  { %1001 = vsyncpa [#allocation4], 1 }
 0x5ac   :  { %1003 = vsyncpa [#allocation4 + $0x1], 1 }

</bundles_post_ra>
